<compile_context>
chip_gen: v7x
topology: tpu7x:2x2x1
jax: 0.10.0
libtpu: 0.0.40
codegen_flags: <defaults>
</compile_context>

<pallas_src>
import functools

import jax
import jax.numpy as jnp
from jax.experimental import pallas as pl
from jax.experimental.pallas import tpu as pltpu


def _round_up(x, m):
    return ((x + m - 1) // m) * m


def _cdiv(a, b):
    return -(-a // b)


def _vmem_capacity_bytes():
    """Per-core VMEM capacity; conservative (v7x, 64 MiB) fallback on failure."""
    try:
        cap = int(getattr(pltpu.get_tpu_info(), "vmem_capacity_bytes", 0))
        if cap > 0:
            return cap
    except Exception:
        pass
    return 64 * 1024 * 1024


def _pick_tile_r(rows, max_tile):
    """Row tile: multiple of 16 (bf16 sublane pack), capped by the VMEM budget
    (up to 1024 rows), and chosen so the grid has >=2 steps when possible so
    the 'parallel' axis can be split across v7x's two TensorCores."""
    max_tile = max(16, min((max_tile // 16) * 16, 1024))
    if rows <= 16:
        return 16
    steps = max(2, _cdiv(rows, max_tile))
    return min(max_tile, _round_up(_cdiv(rows, steps), 16))


def _split_rows(w, sizes):
    chunks, off = [], 0
    for s in sizes:
        chunks.append(w[off:off + s])
        off += s
    assert off == w.shape[0]
    return chunks


# --------------------------------------------------------------------------
# Kernel
# --------------------------------------------------------------------------
def _make_generator_kernel(num_residual, seg_offsets_p, compute_dtype):
    """Fused residual-MLP kernel.

    refs: x, w_0, b_0, ..., w_{L-1}, b_{L-1}, w_final, b_final, out, h_scratch
    h_scratch columns hold the running concat [x | out_0 | ... | out_{L-1}] at
    the 128-aligned offsets seg_offsets_p; weight w_i is the pre-concatenated
    (seg_offsets_p[i+1], g_p) operand so each layer is a single MXU matmul
    with in-MXU accumulation over the whole concat K.
    """
    L = num_residual
    offs = tuple(int(o) for o in seg_offsets_p)

    def kernel(x_ref, *rest):
        prm, out_ref, h_ref = rest[:-2], rest[-2], rest[-1]
        h_ref[:, 0:offs[1]] = x_ref[...]
        for li in range(L):
            w = prm[2 * li][...]                       # (offs[li+1], g_p) bf16
            b = prm[2 * li + 1][...]                   # (1, g_p) f32
            z = jnp.dot(h_ref[:, 0:offs[li + 1]], w,
                        preferred_element_type=jnp.float32)
            # eval-mode BN already folded into w/b at pack time; ReLU in f32.
            h_ref[:, offs[li + 1]:offs[li + 2]] = jnp.maximum(
                z + b, 0.0).astype(compute_dtype)
        z = jnp.dot(h_ref[:, 0:offs[L + 1]], prm[2 * L][...],
                    preferred_element_type=jnp.float32)
        out_ref[...] = (z + prm[2 * L + 1][...]).astype(out_ref.dtype)

    return kernel


# --------------------------------------------------------------------------
# Wrapper
# --------------------------------------------------------------------------
def generator_forward(x, flat_params, *, num_residual, embedding_dim, data_dim,
                      out_dtype=jnp.float32):
    """x: (N, embedding_dim). flat_params: output of pack_generator_params.
    out_dtype=jnp.bfloat16 halves output HBM traffic if the caller tolerates it."""
    L = num_residual
    assert len(flat_params) == 2 * L + 2, (len(flat_params), 2 * L + 2)
    ws = [flat_params[2 * i] for i in range(L + 1)]
    cdt = ws[0].dtype                                   # compute dtype (bf16)

    # Reconstruct the 128-aligned concat layout from the packed weight shapes.
    e_p = int(ws[0].shape[0])
    assert e_p == _round_up(embedding_dim, 128)
    offs = [0, e_p]
    for li in range(L):
        offs.append(offs[-1] + int(ws[li].shape[1]))
    total_p = offs[L + 1]
    assert int(ws[L].shape[0]) == total_p
    d_p = int(ws[L].shape[1])

    rows = int(x.shape[0])
    out_itemsize = jnp.dtype(out_dtype).itemsize
    cdt_itemsize = jnp.dtype(cdt).itemsize
    param_bytes = sum(int(p.size) * p.dtype.itemsize for p in flat_params)
    max_np = max(d_p, max(int(w.shape[1]) for w in ws))

    # Generation-aware row-tile sizing: (possibly double-buffered) resident
    # params + double-buffered x/out tiles + concat scratch + one f32
    # intermediate must stay under ~70% of this chip's VMEM.
    capacity = _vmem_capacity_bytes()
    per_row = (2 * cdt_itemsize * e_p                 # x tile, double-buffered
               + 2 * out_itemsize * d_p               # out tile, double-buffered
               + cdt_itemsize * total_p               # concat scratch
               + 4 * max_np)                          # f32 matmul-result headroom
    budget = int(0.70 * capacity) - 2 * param_bytes - (4 << 20)
    tile_r = _pick_tile_r(rows, max(budget, 16 * per_row) // per_row)
    rows_p = _round_up(rows, tile_r)
    grid = (rows_p // tile_r,)

    # Skip the pad copy when shapes are already tile/lane aligned.
    if rows_p == rows and e_p == embedding_dim:
        x_p = x.astype(cdt)
    else:
        x_p = jnp.zeros((rows_p, e_p), cdt).at[:rows, :embedding_dim].set(
            x.astype(cdt))

    kernel = _make_generator_kernel(L, offs, cdt)

    in_specs = [pl.BlockSpec((tile_r, e_p), lambda i: (i, 0))]
    for p in flat_params:
        # Full-array blocks, constant index_map -> VMEM-resident, no re-DMA.
        in_specs.append(pl.BlockSpec(p.shape, lambda i: (0, 0)))
    out_specs = pl.BlockSpec((tile_r, d_p), lambda i: (i, 0))
    out_shape = jax.ShapeDtypeStruct((rows_p, d_p), out_dtype)
    scratch_shapes = [pltpu.VMEM((tile_r, total_p), cdt)]

    flops = 2 * rows_p * sum(int(w.shape[0]) * int(w.shape[1]) for w in ws)
    bytes_accessed = (param_bytes
                      + rows_p * e_p * cdt_itemsize
                      + rows_p * d_p * out_itemsize)
    cost = pl.CostEstimate(flops=int(flops), transcendentals=0,
                           bytes_accessed=int(bytes_accessed))

    # vmem_limit: at least what we need, at most ~75% of physical VMEM
    # (48 MiB on v7x's 64 MiB parts; up to 96 MiB on 128 MiB v5e/v6e parts).
    need = 2 * param_bytes + tile_r * per_row + (2 << 20)
    vmem_limit = int(min(max(need, 32 << 20), int(0.75 * capacity)))
    vmem_limit = int(min(max(vmem_limit, need), capacity))

    fn = pl.pallas_call(
        kernel,
        grid=grid,
        in_specs=in_specs,
        out_specs=out_specs,
        out_shape=out_shape,
        scratch_shapes=scratch_shapes,
        compiler_params=pltpu.CompilerParams(
            dimension_semantics=("parallel",),
            vmem_limit_bytes=vmem_limit),
        cost_estimate=cost,
    )
    out = fn(x_p, *flat_params)
    if rows_p == rows and d_p == data_dim:
        return out
    return out[:rows, :data_dim]


# --------------------------------------------------------------------------
# Parameter init / packing (BN folding, concat-K weight packing, 128-padding)
# --------------------------------------------------------------------------
def init_generator_params(key, embedding_dim, generator_dim, data_dim):
    """Linear weights stored as (in, out); BN params as if after training."""
    params = {"residual": [], "final": None}
    dim = embedding_dim
    for g in generator_dim:
        key, kw, kb, kg, kbe, km, kv = jax.random.split(key, 7)
        bound = dim ** -0.5
        params["residual"].append(dict(
            w=jax.random.uniform(kw, (dim, g), jnp.float32, -bound, bound),
            b=jax.random.uniform(kb, (g,), jnp.float32, -bound, bound),
            gamma=jax.random.uniform(kg, (g,), jnp.float32, 0.5, 1.5),
            beta=0.1 * jax.random.normal(kbe, (g,), jnp.float32),
            mean=0.1 * jax.random.normal(km, (g,), jnp.float32),
            var=jax.random.uniform(kv, (g,), jnp.float32, 0.5, 1.5),
        ))
        dim += g
    key, kw, kb = jax.random.split(key, 3)
    bound = dim ** -0.5
    params["final"] = dict(
        w=jax.random.uniform(kw, (dim, data_dim), jnp.float32, -bound, bound),
        b=jax.random.uniform(kb, (data_dim,), jnp.float32, -bound, bound),
    )
    return params


def pack_generator_params(params, embedding_dim, generator_dim, data_dim,
                          eps=1e-5, compute_dtype=jnp.bfloat16):
    """Fold eval-mode BN into each Linear, reorder weight rows from torch's
    concat order ([out_{i-1}, ..., out_0, x]) into the kernel's scratch layout
    ([x | out_0 | out_1 | ...], each segment zero-padded to a multiple of 128),
    and pre-concatenate every layer's chunks along K into ONE MXU operand.
    Weights are cast to compute_dtype (bf16); biases stay f32 as (1, n_p) rows."""
    L = len(generator_dim)
    segs = [embedding_dim] + list(generator_dim)
    segs_p = [_round_up(s, 128) for s in segs]
    offs_p = [0]
    for s in segs_p:
        offs_p.append(offs_p[-1] + s)

    def pack_layer(w_f, b_f, n_seg, n_out, n_out_p):
        # torch row order of this layer's input concat: [out_{n_seg-2},...,out_0,x]
        order = list(range(n_seg - 1, -1, -1))
        chunks = _split_rows(w_f, [segs[k] for k in order])
        W = jnp.zeros((offs_p[n_seg], n_out_p), compute_dtype)
        for pos, k in enumerate(order):
            W = W.at[offs_p[k]:offs_p[k] + segs[k], :n_out].set(
                chunks[pos].astype(compute_dtype))
        b = jnp.zeros((1, n_out_p), jnp.float32).at[0, :n_out].set(b_f)
        return W, b

    flat = []
    for li in range(L):
        layer = params["residual"][li]
        g, g_p = generator_dim[li], segs_p[li + 1]
        scale = layer["gamma"] * jax.lax.rsqrt(layer["var"] + eps)
        w_f = layer["w"] * scale[None, :]
        b_f = (layer["b"] - layer["mean"]) * scale + layer["beta"]
        flat.extend(pack_layer(w_f, b_f, li + 1, g, g_p))

    d_p = _round_up(data_dim, 128)
    flat.extend(pack_layer(params["final"]["w"], params["final"]["b"],
                           L + 1, data_dim, d_p))
    return tuple(flat)


def generator_reference(x, params, eps=1e-5):
    """Pure-JAX f32 reference (eval-mode BN), mirroring the torch module."""
    h = x
    for layer in params["residual"]:
        z = h @ layer["w"] + layer["b"]
        z = (z - layer["mean"]) * jax.lax.rsqrt(layer["var"] + eps) \
            * layer["gamma"] + layer["beta"]
        h = jnp.concatenate([jnp.maximum(z, 0.0), h], axis=1)
    return h @ params["final"]["w"] + params["final"]["b"]


if __name__ == "__main__":
    batch = 8
    embedding_dim = 32
    generator_dim = (32, 32)
    data_dim = 48

    key = jax.random.PRNGKey(0)
    key, kx = jax.random.split(key)
    x = jax.random.normal(kx, (batch, embedding_dim), dtype=jnp.float32)

    params = init_generator_params(key, embedding_dim, generator_dim, data_dim)
    flat = pack_generator_params(params, embedding_dim, generator_dim, data_dim)

    fwd = jax.jit(functools.partial(
        generator_forward,
        num_residual=len(generator_dim),
        embedding_dim=embedding_dim,
        data_dim=data_dim))

    out = jax.block_until_ready(fwd(x, flat))

    assert out.shape == (batch, data_dim), out.shape
    assert bool(jnp.all(jnp.isfinite(out)))

    ref = generator_reference(x, params)
    max_err = float(jnp.max(jnp.abs(out - ref)))
    assert max_err < 0.1, f"max abs error vs reference: {max_err}"

    print("KERNEL_OK")
</pallas_src>

<mosaic_0001>
module attributes {stable_mosaic.version = 11 : i64} {
  func.func @kernel(%arg0: i32, %arg1: memref<16x128xbf16, #tpu.memory_space<vmem>>, %arg2: memref<128x128xbf16, #tpu.memory_space<vmem>>, %arg3: memref<1x128xf32, #tpu.memory_space<vmem>>, %arg4: memref<256x128xbf16, #tpu.memory_space<vmem>>, %arg5: memref<1x128xf32, #tpu.memory_space<vmem>>, %arg6: memref<384x128xbf16, #tpu.memory_space<vmem>>, %arg7: memref<1x128xf32, #tpu.memory_space<vmem>>, %arg8: memref<16x128xf32, #tpu.memory_space<vmem>>, %arg9: memref<16x384xbf16, #tpu.memory_space<vmem>>) attributes {dimension_semantics = [#tpu.dimension_semantics<parallel>], iteration_bounds = array<i64: 1>, scalar_prefetch = 0 : i64, scratch_operands = 1 : i64, tpu.core_type = #tpu.core_type<tc>, window_params = [{transform_indices = @transform_0, window_bounds = array<i64: 16, 128>}, {pipeline_mode = #tpu.pipeline_mode<synchronous>, transform_indices = @transform_1, window_bounds = array<i64: 128, 128>}, {pipeline_mode = #tpu.pipeline_mode<synchronous>, transform_indices = @transform_2, window_bounds = array<i64: 1, 128>}, {pipeline_mode = #tpu.pipeline_mode<synchronous>, transform_indices = @transform_3, window_bounds = array<i64: 256, 128>}, {pipeline_mode = #tpu.pipeline_mode<synchronous>, transform_indices = @transform_4, window_bounds = array<i64: 1, 128>}, {pipeline_mode = #tpu.pipeline_mode<synchronous>, transform_indices = @transform_5, window_bounds = array<i64: 384, 128>}, {pipeline_mode = #tpu.pipeline_mode<synchronous>, transform_indices = @transform_6, window_bounds = array<i64: 1, 128>}, {transform_indices = @transform_7, window_bounds = array<i64: 16, 128>}]} {
    %c0 = arith.constant 0 : index
    %c0_0 = arith.constant 0 : index
    %0 = vector.load %arg1[%c0, %c0_0] : memref<16x128xbf16, #tpu.memory_space<vmem>>, vector<16x128xbf16>
    %c0_1 = arith.constant 0 : index
    %c0_2 = arith.constant 0 : index
    %1 = vector.load %arg9[%c0_1, %c0_2] : memref<16x384xbf16, #tpu.memory_space<vmem>>, vector<16x128xbf16>
    tpu.vector_store %arg9[%c0_1, %c0_2], %0 {strides = array<i32>} : memref<16x384xbf16, #tpu.memory_space<vmem>>, vector<16x128xbf16>,
    %c0_3 = arith.constant 0 : index
    %c0_4 = arith.constant 0 : index
    %2 = vector.load %arg2[%c0_3, %c0_4] : memref<128x128xbf16, #tpu.memory_space<vmem>>, vector<128x128xbf16>
    %c0_5 = arith.constant 0 : index
    %c0_6 = arith.constant 0 : index
    %3 = vector.load %arg3[%c0_5, %c0_6] : memref<1x128xf32, #tpu.memory_space<vmem>>, vector<1x128xf32>
    %c0_7 = arith.constant 0 : index
    %c0_8 = arith.constant 0 : index
    %4 = vector.load %arg9[%c0_7, %c0_8] : memref<16x384xbf16, #tpu.memory_space<vmem>>, vector<16x128xbf16>
    %cst = arith.constant dense<0.000000e+00> : vector<16x128xf32>
    %5 = tpu.matmul %4, %2, %cst {dimension_numbers = #tpu.dot_dimension_numbers<[1], [0], [0], [1], [0, 0, 1, 1], [], []>} : vector<16x128xbf16>, vector<128x128xbf16>, vector<16x128xf32> -> vector<16x128xf32>
    %6 = vector.broadcast %3 : vector<1x128xf32> to vector<16x128xf32>
    %7 = arith.addf %5, %6 : vector<16x128xf32>
    %cst_9 = arith.constant 0.000000e+00 : f32
    %8 = vector.broadcast %cst_9 : f32 to vector<16x128xf32>
    %9 = arith.maximumf %7, %8 : vector<16x128xf32>
    %10 = arith.truncf %9 : vector<16x128xf32> to vector<16x128xbf16>
    %c0_10 = arith.constant 0 : index
    %c128 = arith.constant 128 : index
    %11 = vector.load %arg9[%c0_10, %c128] : memref<16x384xbf16, #tpu.memory_space<vmem>>, vector<16x128xbf16>
    tpu.vector_store %arg9[%c0_10, %c128], %10 {strides = array<i32>} : memref<16x384xbf16, #tpu.memory_space<vmem>>, vector<16x128xbf16>,
    %c0_11 = arith.constant 0 : index
    %c0_12 = arith.constant 0 : index
    %12 = vector.load %arg4[%c0_11, %c0_12] : memref<256x128xbf16, #tpu.memory_space<vmem>>, vector<256x128xbf16>
    %c0_13 = arith.constant 0 : index
    %c0_14 = arith.constant 0 : index
    %13 = vector.load %arg5[%c0_13, %c0_14] : memref<1x128xf32, #tpu.memory_space<vmem>>, vector<1x128xf32>
    %c0_15 = arith.constant 0 : index
    %c0_16 = arith.constant 0 : index
    %14 = vector.load %arg9[%c0_15, %c0_16] : memref<16x384xbf16, #tpu.memory_space<vmem>>, vector<16x256xbf16>
    %cst_17 = arith.constant dense<0.000000e+00> : vector<16x128xf32>
    %15 = tpu.matmul %14, %12, %cst_17 {dimension_numbers = #tpu.dot_dimension_numbers<[1], [0], [0], [1], [0, 0, 1, 1], [], []>} : vector<16x256xbf16>, vector<256x128xbf16>, vector<16x128xf32> -> vector<16x128xf32>
    %16 = vector.broadcast %13 : vector<1x128xf32> to vector<16x128xf32>
    %17 = arith.addf %15, %16 : vector<16x128xf32>
    %cst_18 = arith.constant 0.000000e+00 : f32
    %18 = vector.broadcast %cst_18 : f32 to vector<16x128xf32>
    %19 = arith.maximumf %17, %18 : vector<16x128xf32>
    %20 = arith.truncf %19 : vector<16x128xf32> to vector<16x128xbf16>
    %c0_19 = arith.constant 0 : index
    %c256 = arith.constant 256 : index
    %21 = vector.load %arg9[%c0_19, %c256] : memref<16x384xbf16, #tpu.memory_space<vmem>>, vector<16x128xbf16>
    tpu.vector_store %arg9[%c0_19, %c256], %20 {strides = array<i32>} : memref<16x384xbf16, #tpu.memory_space<vmem>>, vector<16x128xbf16>,
    %c0_20 = arith.constant 0 : index
    %c0_21 = arith.constant 0 : index
    %22 = vector.load %arg9[%c0_20, %c0_21] : memref<16x384xbf16, #tpu.memory_space<vmem>>, vector<16x384xbf16>
    %c0_22 = arith.constant 0 : index
    %c0_23 = arith.constant 0 : index
    %23 = vector.load %arg6[%c0_22, %c0_23] : memref<384x128xbf16, #tpu.memory_space<vmem>>, vector<384x128xbf16>
    %cst_24 = arith.constant dense<0.000000e+00> : vector<16x128xf32>
    %24 = tpu.matmul %22, %23, %cst_24 {dimension_numbers = #tpu.dot_dimension_numbers<[1], [0], [0], [1], [0, 0, 1, 1], [], []>} : vector<16x384xbf16>, vector<384x128xbf16>, vector<16x128xf32> -> vector<16x128xf32>
    %c0_25 = arith.constant 0 : index
    %c0_26 = arith.constant 0 : index
    %25 = vector.load %arg7[%c0_25, %c0_26] : memref<1x128xf32, #tpu.memory_space<vmem>>, vector<1x128xf32>
    %26 = vector.broadcast %25 : vector<1x128xf32> to vector<16x128xf32>
    %27 = arith.addf %24, %26 : vector<16x128xf32>
    %c0_27 = arith.constant 0 : index
    %c0_28 = arith.constant 0 : index
    %28 = vector.load %arg8[%c0_27, %c0_28] : memref<16x128xf32, #tpu.memory_space<vmem>>, vector<16x128xf32>
    tpu.vector_store %arg8[%c0_27, %c0_28], %27 {strides = array<i32>} : memref<16x128xf32, #tpu.memory_space<vmem>>, vector<16x128xf32>,
    return
  }
  func.func @transform_0(%arg0: i32) -> (i32, i32) {
    %c0_i32 = arith.constant 0 : i32
    %c0_i32_0 = arith.constant 0 : i32
    return %arg0, %c0_i32 : i32, i32
  }
  func.func @transform_1(%arg0: i32) -> (i32, i32) {
    %c0_i32 = arith.constant 0 : i32
    %c0_i32_0 = arith.constant 0 : i32
    %c0_i32_1 = arith.constant 0 : i32
    return %c0_i32, %c0_i32_0 : i32, i32
  }
  func.func @transform_2(%arg0: i32) -> (i32, i32) {
    %c0_i32 = arith.constant 0 : i32
    %c0_i32_0 = arith.constant 0 : i32
    %c0_i32_1 = arith.constant 0 : i32
    return %c0_i32, %c0_i32_0 : i32, i32
  }
  func.func @transform_3(%arg0: i32) -> (i32, i32) {
    %c0_i32 = arith.constant 0 : i32
    %c0_i32_0 = arith.constant 0 : i32
    %c0_i32_1 = arith.constant 0 : i32
    return %c0_i32, %c0_i32_0 : i32, i32
  }
  func.func @transform_4(%arg0: i32) -> (i32, i32) {
    %c0_i32 = arith.constant 0 : i32
    %c0_i32_0 = arith.constant 0 : i32
    %c0_i32_1 = arith.constant 0 : i32
    return %c0_i32, %c0_i32_0 : i32, i32
  }
  func.func @transform_5(%arg0: i32) -> (i32, i32) {
    %c0_i32 = arith.constant 0 : i32
    %c0_i32_0 = arith.constant 0 : i32
    %c0_i32_1 = arith.constant 0 : i32
    return %c0_i32, %c0_i32_0 : i32, i32
  }
  func.func @transform_6(%arg0: i32) -> (i32, i32) {
    %c0_i32 = arith.constant 0 : i32
    %c0_i32_0 = arith.constant 0 : i32
    %c0_i32_1 = arith.constant 0 : i32
    return %c0_i32, %c0_i32_0 : i32, i32
  }
  func.func @transform_7(%arg0: i32) -> (i32, i32) {
    %c0_i32 = arith.constant 0 : i32
    %c0_i32_0 = arith.constant 0 : i32
    return %arg0, %c0_i32 : i32, i32
  }
}

</mosaic_0001>

<bundles_post_ra>
// kernel: generator_forward.1
= control target key start
LH: loop header
LB: loop body
LE: loop exit
PB: predicated region body
PF: predicated region fallthrough
CT: control target
= control target key end

     0   :  { %12 = vsyncpa [#allocation4], 0  ;;  %s1090_s0 = inlined_call_operand.vmem [shape: bf16[16,128], index: 0, kind: input, shape index: {}]   ;;  %s1091_s1 = inlined_call_operand.hbm [shape: bf16[128,128], index: 1, kind: input, shape index: {}]   ;;  %s1092_s2 = inlined_call_operand.vmem [shape: f32[1,128], index: 2, kind: input, shape index: {}]   ;;  %s1093_s3 = inlined_call_operand.hbm [shape: bf16[256,128], index: 3, kind: input, shape index: {}]   ;;  %s1094_s4 = inlined_call_operand.vmem [shape: f32[1,128], index: 4, kind: input, shape index: {}]   ;;  %s1095_s5 = inlined_call_operand.hbm [shape: bf16[384,128], index: 5, kind: input, shape index: {}]   ;;  %s1096_s6 = inlined_call_operand.vmem [shape: f32[1,128], index: 6, kind: input, shape index: {}]   ;;  %s1097_s7 = inlined_call_operand.vmem [shape: f32[16,128], index: 7, kind: output, shape index: {}]  }
   0x1   :  { %13 = vsyncpa [#allocation6], 0  ;;  %s948_s24 = smov [#allocation5]   ;;  %s949_s26 = smov [#allocation3]  }
   0x2   :  { %s35_s25 = sshll.u32 %s948_s24, 4  ;;  %s21_s27 = sshll.u32 %s949_s26, 4  ;;  %s36_s25 = int_to_ptr.vmem [resolvable:$true] %s35_s25  ;;  %s995_s27 = int_to_ptr.vmem [resolvable:$true] %s21_s27 }
   0x3   :  { %s878_s30 = scalar_lea.hbm %s1093_s3, 2048 }
   0x4   :  { %p879_p0 = scmp.ne.s32.totalorder %s1093_s3, %s878_s30  ;;  %p882_p1 = scmp.lt.u32.totalorder %s878_s30, %s1093_s3 }
   0x6   :  { %p884_p2 = pnand %p882_p1, %p879_p0 }
   0x8   :  { %887 = shalt.err (!%p884_p2)
}
   0x9   :  { %s888_s12 = scalar_lea.vmem %s36_s25, 2048  ;;  %p893_p4 = scmp.lt.s32.totalorder %s36_s25, %s36_s25 }
   0xa   :  { %p889_p3 = scmp.ne.s32.totalorder %s36_s25, %s888_s12  ;;  %p894_p5 = scmp.lt.s32.totalorder %s888_s12, %s888_s12 }
   0xc   :  { %p895_p6 = por %p894_p5, %p893_p4 }
   0xe   :  { %p896_p7 = pnand %p895_p6, %p889_p3 }
  0x10   :  { %899 = shalt.err (!%p896_p7)
}
  0x11   :  { %s950_s13 = smov 64   ;;  %s951_s14 = smov 4  }
  0x12   :  { %41 = dma.hbm_to_vmem [thread:$0]  %s1093_s3, 2048, %s36_s25, [#allocation6], %s950_s13, %s950_s13, %s951_s14  }
  0x13   :  { %s900_s19 = scalar_lea.hbm %s1091_s1, 1024 }
  0x14   :  { %p901_p8 = scmp.ne.s32.totalorder %s1091_s1, %s900_s19  ;;  %p904_p9 = scmp.lt.u32.totalorder %s900_s19, %s1091_s1 }
  0x16   :  { %p906_p10 = pnand %p904_p9, %p901_p8 }
  0x18   :  { %909 = shalt.err (!%p906_p10)
}
  0x19   :  { %s910_s24 = scalar_lea.vmem %s995_s27, 1024  ;;  %p915_p12 = scmp.lt.s32.totalorder %s995_s27, %s995_s27 }
  0x1a   :  { %p911_p11 = scmp.ne.s32.totalorder %s995_s27, %s910_s24  ;;  %p916_p13 = scmp.lt.s32.totalorder %s910_s24, %s910_s24 }
  0x1c   :  { %p917_p0 = por %p916_p13, %p915_p12 }
  0x1e   :  { %p918_p1 = pnand %p917_p0, %p911_p11 }
  0x20   :  { %921 = shalt.err (!%p918_p1)
}
  0x21   :  { %27 = dma.hbm_to_vmem [thread:$0]  %s1091_s1, 1024, %s995_s27, [#allocation4], %s950_s13, %s950_s13, %s951_s14  }
  0x22   :  { %s952_s26 = smov [#allocation7]   ;;  %s922_s8 = scalar_lea.hbm %s1095_s5, 3072 }
  0x23   :  { %s49_s28 = sshll.u32 %s952_s26, 4  ;;  %p923_p2 = scmp.ne.s32.totalorder %s1095_s5, %s922_s8  ;;  %s50_s28 = int_to_ptr.vmem [resolvable:$true] %s49_s28 }
  0x24   :  { %p926_p3 = scmp.lt.u32.totalorder %s922_s8, %s1095_s5 }
  0x26   :  { %p928_p4 = pnand %p926_p3, %p923_p2 }
  0x28   :  { %931 = shalt.err (!%p928_p4)
}
  0x29   :  { %s932_s15 = scalar_lea.vmem %s50_s28, 3072  ;;  %p937_p6 = scmp.lt.s32.totalorder %s50_s28, %s50_s28 }
  0x2a   :  { %p933_p5 = scmp.ne.s32.totalorder %s50_s28, %s932_s15  ;;  %p938_p7 = scmp.lt.s32.totalorder %s932_s15, %s932_s15 }
  0x2c   :  { %p939_p8 = por %p938_p7, %p937_p6 }
  0x2e   :  { %p940_p9 = pnand %p939_p8, %p933_p5 }
  0x30   :  { %943 = shalt.err (!%p940_p9)
}
  0x31   :  { %55 = dma.hbm_to_vmem [thread:$0]  %s1095_s5, 3072, %s50_s28, [#allocation6], %s950_s13, %s950_s13, %s951_s14  }
  0x32   :  { %944 = dma.done.wait [#allocation4], 1024  }
  0x33   :  { %945 = vsyncadd [#allocation4], 4294966272 }
  0x34   :  { %946 = dma.done.wait [#allocation6], 5120  }
  0x35   :  { %947 = vsyncadd [#allocation6], 4294962176  ;;  %v953_v0 = vmov 0.0   ;;  %vm954_vm0 = vmmov 0   ;;  %v829_v1 = vld [vmem:[#allocation3] sm:$0xff]   ;;  %v830_v2 = vld [vmem:[#allocation3 + $0x8] sm:$0xff]  }
  0x36   :  { %782 = vmatprep.subr.bf16.mxu0 %v953_v0  ;;  %798 = vmatprep.mubr.msk.bf16.mxu0 %vm954_vm0, %v953_v0  ;;  %v831_v3 = vld [vmem:[#allocation3 + $0x10] sm:$0xff]   ;;  %v832_v4 = vld [vmem:[#allocation3 + $0x18] sm:$0xff]   ;;  %v838_v5 = vld [vmem:[#allocation5 + $0x40] sm:$0xff]  }
  0x37   :  { %783 = vmatpush3.bf16.msra.mxu0 %v829_v1  ;;  %v839_v6 = vld [vmem:[#allocation5] sm:$0xff]   ;;  %729 = vmatprep.subr.bf16.mxu1 %v838_v5  ;;  %v840_v7 = vld [vmem:[#allocation5 + $0x48] sm:$0xff]   ;;  %v842_v9 = vld [vmem:[#allocation5 + $0x50] sm:$0xff]  }
  0x38   :  { %784 = vmatprep.subr.bf16.mxu0 %v953_v0  ;;  %730 = vmatpush3.bf16.msra.mxu1 %v839_v6  ;;  %v841_v8 = vld [vmem:[#allocation5 + $0x8] sm:$0xff]   ;;  %v833_v10 = vld [vmem:[#allocation3 + $0x20] sm:$0xff]   ;;  %v843_v11 = vld [vmem:[#allocation5 + $0x10] sm:$0xff]  }
  0x39   :  { %731 = vmatprep.subr.bf16.mxu1 %v840_v7  ;;  %v844_v12 = vld [vmem:[#allocation5 + $0x58] sm:$0xff]   ;;  %v834_v13 = vld [vmem:[#allocation3 + $0x28] sm:$0xff]   ;;  %v835_v14 = vld [vmem:[#allocation3 + $0x30] sm:$0xff]  }
  0x3a   :  { %v845_v15 = vld [vmem:[#allocation5 + $0x18] sm:$0xff]   ;;  %v846_v16 = vld [vmem:[#allocation5 + $0x60] sm:$0xff]   ;;  %v848_v18 = vld [vmem:[#allocation5 + $0x68] sm:$0xff]  }
  0x3b   :  { %785 = vmatpush3.bf16.msra.mxu0 %v830_v2  ;;  %v847_v17 = vld [vmem:[#allocation5 + $0x20] sm:$0xff]   ;;  %v836_v19 = vld [vmem:[#allocation3 + $0x38] sm:$0xff]   ;;  %v849_v20 = vld [vmem:[#allocation5 + $0x28] sm:$0xff]  }
  0x3c   :  { %786 = vmatprep.subr.bf16.mxu0 %v953_v0  ;;  %732 = vmatpush3.bf16.msra.mxu1 %v841_v8  ;;  %v1060_v21 = vld [vmem:[%s1090_s0] sm:$0xff]   ;;  %v850_v22 = vld [vmem:[#allocation5 + $0x70] sm:$0xff]   ;;  %v852_v24 = vld [vmem:[#allocation5 + $0x78] sm:$0xff]  }
  0x3d   :  { %733 = vmatprep.subr.bf16.mxu1 %v842_v9  ;;  %v851_v23 = vld [vmem:[#allocation5 + $0x30] sm:$0xff]   ;;  %v853_v25 = vld [vmem:[#allocation5 + $0x38] sm:$0xff]   ;;  %v854_v26 = vld [vmem:[#allocation7 + $0x40] sm:$0xff]  }
  0x3e   :  { %v855_v27 = vld [vmem:[#allocation7] sm:$0xff]   ;;  %v856_v28 = vld [vmem:[#allocation7 + $0x48] sm:$0xff]   ;;  %v858_v30 = vld [vmem:[#allocation7 + $0x50] sm:$0xff]  }
  0x3f   :  { %787 = vmatpush3.bf16.msra.mxu0 %v831_v3  ;;  %v857_v29 = vld [vmem:[#allocation7 + $0x8] sm:$0xff]   ;;  %v859_v31 = vld [vmem:[#allocation7 + $0x10] sm:$0xff]   ;;  %v861_v32 = vld [vmem:[#allocation7 + $0x58] sm:$0xff]  }
  0x40   :  { %788 = vmatprep.subr.bf16.mxu0 %v953_v0  ;;  %734 = vmatpush3.bf16.msra.mxu1 %v843_v11  ;;  %v862_v33 = vld [vmem:[#allocation7 + $0x18] sm:$0xff]   ;;  %v864_v34 = vld [vmem:[#allocation7 + $0x60] sm:$0xff]   ;;  %v867_v36 = vld [vmem:[#allocation7 + $0x68] sm:$0xff]  }
  0x41   :  { %735 = vmatprep.subr.bf16.mxu1 %v844_v12  ;;  %v865_v35 = vld [vmem:[#allocation7 + $0x20] sm:$0xff]   ;;  %v868_v37 = vld [vmem:[#allocation7 + $0x28] sm:$0xff]   ;;  %v870_v38 = vld [vmem:[#allocation7 + $0x70] sm:$0xff]  }
  0x42   :  { %v871_v39 = vld [vmem:[#allocation7 + $0x30] sm:$0xff]   ;;  %v669_v40 = vld [vmem:[%s1092_s2] ss:$0 sm:$0xff]  ;;  %v863_v51 = vld [vmem:[#allocation7 + $0x88] sm:$0xff]  }
  0x43   :  { %789 = vmatpush3.bf16.msra.mxu0 %v832_v4  ;;  %v860_v50 = vld [vmem:[#allocation7 + $0x80] sm:$0xff]   ;;  %v866_v52 = vld [vmem:[#allocation7 + $0x90] sm:$0xff]   ;;  %v869_v53 = vld [vmem:[#allocation7 + $0x98] sm:$0xff]  }
  0x44   :  { %790 = vmatprep.subr.bf16.mxu0 %v953_v0  ;;  %736 = vmatpush3.bf16.msra.mxu1 %v845_v15  ;;  %v872_v54 = vld [vmem:[#allocation7 + $0xa0] sm:$0xff]   ;;  %v873_v55 = vld [vmem:[#allocation7 + $0x78] sm:$0xff]   ;;  %v875_v57 = vld [vmem:[#allocation7 + $0xa8] sm:$0xff]  }
  0x45   :  { %737 = vmatprep.subr.bf16.mxu1 %v846_v16  ;;  %v874_v56 = vld [vmem:[#allocation7 + $0x38] sm:$0xff]   ;;  %v876_v58 = vld [vmem:[#allocation7 + $0xb0] sm:$0xff]   ;;  %v678_v61 = vld [vmem:[%s1094_s4] ss:$0 sm:$0xff] }
  0x46   :  { %v877_v59 = vld [vmem:[#allocation7 + $0xb8] sm:$0xff]  }
  0x47   :  { %791 = vmatpush3.bf16.msra.mxu0 %v833_v10 }
  0x48   :  { %792 = vmatprep.subr.bf16.mxu0 %v953_v0  ;;  %738 = vmatpush3.bf16.msra.mxu1 %v847_v17 }
  0x49   :  { %739 = vmatprep.subr.bf16.mxu1 %v848_v18 }
  0x4b   :  { %793 = vmatpush3.bf16.msra.mxu0 %v834_v13 }
  0x4c   :  { %794 = vmatprep.subr.bf16.mxu0 %v953_v0  ;;  %740 = vmatpush3.bf16.msra.mxu1 %v849_v20 }
  0x4d   :  { %741 = vmatprep.subr.bf16.mxu1 %v850_v22 }
  0x4f   :  { %795 = vmatpush3.bf16.msra.mxu0 %v835_v14  ;;  %v695_v14 = vld [vmem:[%s1096_s6] ss:$0 sm:$0xff] }
  0x50   :  { %796 = vmatprep.subr.bf16.mxu0 %v953_v0  ;;  %742 = vmatpush3.bf16.msra.mxu1 %v851_v23 }
  0x51   :  { %743 = vmatprep.subr.bf16.mxu1 %v852_v24 }
  0x53   :  { %797 = vmatpush3.bf16.msra.mxu0 %v836_v19 }
  0x54   :  { %744 = vmatpush3.bf16.msra.mxu1 %v853_v25  ;;  %751 = vmatprep.subr.bf16.mxu0 %v854_v26 }
  0x55   :  { %802 = vmatprep.subr.bf16.mxu1 %v953_v0 }
  0x56   :  { %799 = vmatmul.mubr.bf16.vlgmr.msra.gmra.mrb[0].mxu0 %v1060_v21 }
  0x57   :  { %752 = vmatpush3.bf16.msra.mxu0 %v855_v27 }
  0x58   :  { %753 = vmatprep.subr.bf16.mxu0 %v856_v28 }
  0x5b   :  { %754 = vmatpush3.bf16.msra.mxu0 %v857_v29 }
  0x5c   :  { %755 = vmatprep.subr.bf16.mxu0 %v858_v30 }
  0x5f   :  { %756 = vmatpush3.bf16.msra.mxu0 %v859_v31 }
  0x60   :  { %757 = vmatprep.subr.bf16.mxu0 %v861_v32 }
  0x63   :  { %758 = vmatpush3.bf16.msra.mxu0 %v862_v33 }
  0x64   :  { %759 = vmatprep.subr.bf16.mxu0 %v864_v34 }
  0x67   :  { %760 = vmatpush3.bf16.msra.mxu0 %v865_v35 }
  0x68   :  { %761 = vmatprep.subr.bf16.mxu0 %v867_v36 }
  0x6b   :  { %762 = vmatpush3.bf16.msra.mxu0 %v868_v37 }
  0x6c   :  { %763 = vmatprep.subr.bf16.mxu0 %v870_v38 }
  0x6f   :  { %764 = vmatpush3.bf16.msra.mxu0 %v871_v39 }
  0x70   :  { %765 = vmatprep.subr.bf16.mxu0 %v873_v55 }
  0x73   :  { %766 = vmatpush3.bf16.msra.mxu0 %v874_v56 }
 0x129   :  { %v183_v41 = vpop.f32.mrb[0].mxu0 }
 0x12a   :  { %v184_v42 = vadd.f32 %v669_v40, %v183_v41  ;;  %v800_v43 = vpop.f32.mrb[1].mxu0 }
 0x12b   :  { %v186_v44 = vpop.f32.mrb[2].mxu0 }
 0x12c   :  { %v187_v45 = vadd.f32 %v669_v40, %v186_v44  ;;  %v801_v46 = vpop.f32.mrb[3].mxu0  ;;  %v190_v47 = vmax.f32 %v184_v42, 0.0 }
 0x12e   :  { %v191_v48 = vmax.f32 %v187_v45, 0.0 }
 0x130   :  { %v192_v49 = vpack.c.bf16 %v191_v48, %v190_v47 }
 0x132   :  { %363 = vmatprep.mubr.bf16.mxu1 %v192_v49  ;;  %610 = vmatprep.mubr.bf16.mxu0 %v192_v49 }
 0x133   :  { %364 = vmatmul.mubr.bf16.vlgmr.msra.gmra.mrb[0].mxu1 %v1060_v21  ;;  %611 = vmatmul.mubr.bf16.vlgmr.msra.gmra.mrb[4].mxu0 %v1060_v21 }
 0x134   :  { %803 = vmatpush3.bf16.msra.mxu1 %v860_v50  ;;  %818 = vmatprep.mubr.msk.bf16.mxu1 %vm954_vm0, %v953_v0 }
 0x135   :  { %804 = vmatprep.subr.bf16.mxu1 %v953_v0 }
 0x138   :  { %805 = vmatpush3.bf16.msra.mxu1 %v863_v51 }
 0x139   :  { %806 = vmatprep.subr.bf16.mxu1 %v953_v0 }
 0x13c   :  { %807 = vmatpush3.bf16.msra.mxu1 %v866_v52 }
 0x13d   :  { %808 = vmatprep.subr.bf16.mxu1 %v953_v0 }
 0x140   :  { %809 = vmatpush3.bf16.msra.mxu1 %v869_v53 }
 0x141   :  { %810 = vmatprep.subr.bf16.mxu1 %v953_v0 }
 0x144   :  { %811 = vmatpush3.bf16.msra.mxu1 %v872_v54 }
 0x145   :  { %812 = vmatprep.subr.bf16.mxu1 %v953_v0 }
 0x148   :  { %813 = vmatpush3.bf16.msra.mxu1 %v875_v57 }
 0x149   :  { %814 = vmatprep.subr.bf16.mxu1 %v953_v0 }
 0x14c   :  { %815 = vmatpush3.bf16.msra.mxu1 %v876_v58 }
 0x14d   :  { %816 = vmatprep.subr.bf16.mxu1 %v953_v0 }
 0x150   :  { %817 = vmatpush3.bf16.msra.mxu1 %v877_v59 }
 0x206   :  { %v745_v60 = vpop.f32.mrb[0].mxu1  ;;  %v767_v9 = vpop.f32.mrb[4].mxu0 }
 0x207   :  { %v746_v62 = vpop.f32.mrb[1].mxu1  ;;  %v768_v0 = vpop.f32.mrb[5].mxu0 }
 0x208   :  { %v747_v63 = vadd.f32 %v746_v62, %v745_v60  ;;  %v748_v1 = vpop.f32.mrb[2].mxu1  ;;  %v769_v10 = vadd.f32 %v768_v0, %v767_v9  ;;  %v770_v11 = vpop.f32.mrb[6].mxu0 }
 0x209   :  { %v749_v2 = vpop.f32.mrb[3].mxu1  ;;  %v771_v12 = vpop.f32.mrb[7].mxu0 }
 0x20a   :  { %v366_v3 = vadd.f32 %v747_v63, %v678_v61  ;;  %v750_v4 = vadd.f32 %v749_v2, %v748_v1  ;;  %v772_v13 = vadd.f32 %v771_v12, %v770_v11  ;;  %v613_v15 = vadd.f32 %v769_v10, %v695_v14 }
 0x20c   :  { %v369_v5 = vadd.f32 %v750_v4, %v678_v61  ;;  %v372_v6 = vmax.f32 %v366_v3, 0.0  ;;  %v616_v19 = vadd.f32 %v772_v13, %v695_v14 }
 0x20e   :  { %v373_v7 = vmax.f32 %v369_v5, 0.0 }
 0x210   :  { %v374_v8 = vpack.c.bf16 %v373_v7, %v372_v6 }
 0x212   :  { %819 = vmatmul.mubr.bf16.vlgmr.msra.gmra.mrb[4].mxu1 %v374_v8 }
 0x2e5   :  { %v653_v16 = vpop.f32.mrb[4].mxu1 }
 0x2e6   :  { %v654_v17 = vadd.f32 %v653_v16, %v613_v15  ;;  %v820_v18 = vpop.f32.mrb[5].mxu1 }
 0x2e7   :  { %v656_v20 = vpop.f32.mrb[6].mxu1 }
 0x2e8   :  { %660 = vst [vmem:[%s1097_s7] sm:$0xff] %v654_v17  ;;  %v657_v21 = vadd.f32 %v656_v20, %v616_v19  ;;  %v821_v22 = vpop.f32.mrb[7].mxu1 }
 0x2ea   :  { %661 = vst [vmem:[%s1097_s7 + $0x8] sm:$0xff] %v657_v21 }
 0x2eb   :  { %666 = vsyncpa [#allocation4], 1 }
 0x2ec   :  { %667 = vsyncpa [#allocation6], 1 }

</bundles_post_ra>
